<compile_context>
chip_gen: v5e
topology: v5e:2x2
jax: 0.10.0
libtpu: 0.0.40
codegen_flags: <defaults>
</compile_context>

<pallas_src>
import functools

import jax
import jax.numpy as jnp
from jax.experimental import pallas as pl
from jax.experimental.pallas import tpu as pltpu


def _round_up(x, m):
    return (x + m - 1) // m * m


# ---------------------------------------------------------------------------
# Kernels
# ---------------------------------------------------------------------------
def _projection_kernel_fused(x_ref, w_ref, b_ref, o_ref):
    """Single-K-block path: ReLU -> MXU matmul -> +bias -> store.

    No accumulator scratch and no pl.when phases.
    """
    h = jnp.maximum(x_ref[...], 0.0).astype(w_ref.dtype)              # ReLU (VPU)
    acc = jnp.dot(h, w_ref[...], preferred_element_type=jnp.float32)  # MXU
    o_ref[...] = (acc + b_ref[...]).astype(o_ref.dtype)


def _projection_kernel_ktiled(x_ref, w_ref, b_ref, o_ref, acc_ref):
    """K-tiled path (grid axis 2 = reduction, 'arbitrary', placed last).

    The f32 accumulator is initialized with the broadcast bias at k == 0 so the
    epilogue at k == last is a single cast + store.
    NOTE: every K tile must be fully in-bounds (K is zero-padded at parameter
    prep time and x's K tail is zero-padded in the wrapper) -- otherwise
    garbage would be accumulated into valid rows.
    """
    @pl.when(pl.program_id(2) == 0)
    def _():
        acc_ref[...] = jnp.broadcast_to(b_ref[...], acc_ref.shape)

    h = jnp.maximum(x_ref[...], 0.0).astype(w_ref.dtype)
    acc_ref[...] += jnp.dot(h, w_ref[...], preferred_element_type=jnp.float32)

    @pl.when(pl.program_id(2) == pl.num_programs(2) - 1)
    def _():
        o_ref[...] = acc_ref[...].astype(o_ref.dtype)


# ---------------------------------------------------------------------------
# Parameter prep (one-time, outside the jitted forward)
# ---------------------------------------------------------------------------
def prepare_projection_params(weight, bias, *, compute_dtype=None):
    """One-time layout prep at parameter-load time.

    - transpose nn.Linear weight (out_dim, in_dim) -> (in_dim, out_dim)
    - pad the output (lane) axis to a multiple of 128 (lane-dense stores)
    - for very large in_dim, zero-pad the K axis to a multiple of 512 so the
      reduction can always be tiled (zero rows contribute exactly 0)
    - optionally cast to a narrower MXU dtype (e.g. jnp.bfloat16 on v6e/v7x).
    """
    out_dim, in_dim = weight.shape
    n_pad = _round_up(out_dim, 128)
    k_pad = _round_up(in_dim, 512) if in_dim > 4096 else in_dim

    w_t = weight.T                                          # (in_dim, out_dim)
    b2d = bias.reshape(1, out_dim).astype(jnp.float32)
    if n_pad != out_dim or k_pad != in_dim:
        w_t = jnp.pad(w_t, ((0, k_pad - in_dim), (0, n_pad - out_dim)))
        b2d = jnp.pad(b2d, ((0, 0), (0, n_pad - out_dim)))
    if compute_dtype is not None:
        w_t = w_t.astype(compute_dtype)
    return w_t, b2d, out_dim


def _vmem_budgets():
    """(data-tile budget, scoped-VMEM request cap) per TPU generation."""
    try:
        kind = jax.devices()[0].device_kind.lower()
    except Exception:
        kind = ""
    if "v7" in kind:                       # 64 MiB VMEM / TensorCore: headroom
        return 36 * 2 ** 20, 48 * 2 ** 20
    if "v5" in kind or "v6" in kind:       # 128 MiB VMEM: bigger tiles pay off
        return 72 * 2 ** 20, 100 * 2 ** 20
    return 36 * 2 ** 20, 48 * 2 ** 20      # unknown: stay v7x-safe


# ---------------------------------------------------------------------------
# Forward
# ---------------------------------------------------------------------------
@functools.partial(jax.jit, static_argnames=("out_dim", "tm", "tn", "tk"))
def projection_forward(x, w_t, b2d, *, out_dim, tm=None, tn=None, tk=None):
    """forward(x) = relu(x) @ W^T + b.

    x: (..., in_dim); w_t: (k_pad, n_pad) pre-transposed/padded weight;
    b2d: (1, n_pad) f32 bias; out_dim: logical output width (<= n_pad).
    """
    orig_shape = x.shape
    in_dim = orig_shape[-1]
    k_pad, n_pad = w_t.shape
    assert k_pad >= in_dim

    x2d = x.reshape(-1, in_dim)
    if k_pad != in_dim:
        # Zero-pad the K tail: relu(0) contributes 0 and the padded weight
        # rows are zero, so the result is exact.
        x2d = jnp.pad(x2d, ((0, 0), (0, k_pad - in_dim)))
    M = x2d.shape[0]

    x_b = x2d.dtype.itemsize
    w_b = w_t.dtype.itemsize
    o_b = x.dtype.itemsize

    data_budget, vmem_cap = _vmem_budgets()

    def tile_bytes(tm_, tk_, tn_, with_acc):
        b = (2 * tm_ * tk_ * x_b           # double-buffered x tile
             + 2 * tk_ * tn_ * w_b         # double-buffered weight slab
             + 2 * tm_ * tn_ * o_b         # double-buffered output tile
             + 2 * tn_ * 4)                # bias
        if with_acc:
            b += tm_ * tn_ * 4             # f32 accumulator scratch
        return b

    # ---- tile selection ---------------------------------------------------
    # Row (M) tile: larger default where VMEM allows (fewer grid steps).
    if tm is None:
        tm = 1024 if data_budget >= 64 * 2 ** 20 else 512
    if M > tm:
        tm_eff = tm
    elif M >= 16:
        # >= 2 parallel M programs so v7x's two TensorCores both get work.
        tm_eff = _round_up(pl.cdiv(M, 2), 8)
    else:
        tm_eff = M

    # N / K tiles.  Prefer keeping the whole (padded) weight resident
    # (tn = n_pad, tk = k_pad): the weight is then DMA'd from HBM exactly once
    # and x is streamed exactly once -> minimal HBM traffic.
    if tn is None and tk is None and \
            tile_bytes(tm_eff, k_pad, n_pad, False) <= data_budget:
        tn, tk = n_pad, k_pad
    else:
        if tn is None:
            tn = min(n_pad, 512)
        if tk is None:
            if tile_bytes(tm_eff, k_pad, tn, False) <= data_budget or \
                    k_pad % 512 != 0:
                tk = k_pad                 # single K block (common path)
            else:
                tk = 512                   # K was padded to a 512 multiple
    if tk != k_pad:
        # Partial K tiles would accumulate garbage into valid rows.
        assert k_pad % tk == 0, "K tiling requires k_pad % tk == 0"

    gm = pl.cdiv(M, tm_eff)
    gn = pl.cdiv(n_pad, tn)
    gk = k_pad // tk
    k_tiled = gk > 1

    # Correctness invariant: partial M/N tail tiles read out-of-bounds garbage
    # from x / W, but those products land only in output rows/columns that
    # Pallas masks on writeback.  K tiles are always full (zero-padded), so no
    # out-of-bounds data is ever accumulated into valid outputs.

    # ---- VMEM budget / cost hints ------------------------------------------
    est = tile_bytes(tm_eff, tk, tn, k_tiled)
    vmem_limit = int(min(max(1.5 * est, 32 * 2 ** 20), vmem_cap))

    cost = pl.CostEstimate(
        flops=2 * M * k_pad * n_pad,
        transcendentals=0,
        bytes_accessed=(M * k_pad * x_b * gn          # x re-read once per N block
                        + k_pad * n_pad * w_b * gm    # W re-read once per M block
                        + n_pad * 4 * gm * gk         # bias
                        + M * n_pad * o_b),           # output written once
    )

    if k_tiled:
        kernel = _projection_kernel_ktiled
        grid = (gm, gn, gk)
        in_specs = [
            pl.BlockSpec((tm_eff, tk), lambda i, j, k: (i, k)),   # x tile
            pl.BlockSpec((tk, tn), lambda i, j, k: (k, j)),       # W^T slab
            pl.BlockSpec((1, tn), lambda i, j, k: (0, j)),        # bias
        ]
        out_specs = pl.BlockSpec((tm_eff, tn), lambda i, j, k: (i, j))
        scratch_shapes = [pltpu.VMEM((tm_eff, tn), jnp.float32)]
        dim_sem = ("parallel", "parallel", "arbitrary")
    else:
        kernel = _projection_kernel_fused
        grid = (gm, gn)
        in_specs = [
            pl.BlockSpec((tm_eff, k_pad), lambda i, j: (i, 0)),   # x tile
            pl.BlockSpec((k_pad, tn), lambda i, j: (0, j)),       # W^T slab
            pl.BlockSpec((1, tn), lambda i, j: (0, j)),           # bias
        ]
        out_specs = pl.BlockSpec((tm_eff, tn), lambda i, j: (i, j))
        scratch_shapes = []
        dim_sem = ("parallel", "parallel")

    out = pl.pallas_call(
        kernel,
        out_shape=jax.ShapeDtypeStruct((M, n_pad), x.dtype),
        grid_spec=pltpu.PrefetchScalarGridSpec(
            num_scalar_prefetch=0,
            grid=grid,
            in_specs=in_specs,
            out_specs=out_specs,
            scratch_shapes=scratch_shapes,
        ),
        compiler_params=pltpu.CompilerParams(
            dimension_semantics=dim_sem,
            vmem_limit_bytes=vmem_limit,
        ),
        cost_estimate=cost,
    )(x2d, w_t, b2d)

    out = out[:, :out_dim]
    return out.reshape(*orig_shape[:-1], out_dim)


if __name__ == "__main__":
    key = jax.random.PRNGKey(0)
    k_x, k_w, k_b = jax.random.split(key, 3)

    batch, seq, input_dim, output_dim = 2, 8, 32, 16

    # Deterministic synthetic parameters (mimic nn.Linear default init range).
    x = jax.random.normal(k_x, (batch, seq, input_dim), dtype=jnp.float32)
    bound = 1.0 / (input_dim ** 0.5)
    weight = jax.random.uniform(
        k_w, (output_dim, input_dim), minval=-bound, maxval=bound,
        dtype=jnp.float32)
    bias = jax.random.uniform(
        k_b, (output_dim,), minval=-bound, maxval=bound, dtype=jnp.float32)

    # One-time parameter prep (transpose + lane/K padding), outside the jitted
    # forward.  On v6e/v7x pass compute_dtype=jnp.bfloat16 for ~2x MXU
    # throughput with f32 accumulation; kept f32 here for a tight check.
    w_t, b2d, out_dim = prepare_projection_params(weight, bias)

    out = projection_forward(x, w_t, b2d, out_dim=out_dim)
    out = jax.block_until_ready(out)

    # Reference check against plain JAX.
    ref = jnp.maximum(x, 0.0) @ weight.T + bias
    assert out.shape == (batch, seq, output_dim)
    assert jnp.allclose(out, ref, atol=1e-5, rtol=1e-5)

    print("KERNEL_OK")
</pallas_src>

<mosaic_0001>
module attributes {stable_mosaic.version = 11 : i64} {
  func.func @_projection_kernel_fused(%arg0: i32, %arg1: i32, %arg2: memref<8x32xf32, #tpu.memory_space<vmem>>, %arg3: memref<32x128xf32, #tpu.memory_space<vmem>>, %arg4: memref<1x128xf32, #tpu.memory_space<vmem>>, %arg5: memref<8x128xf32, #tpu.memory_space<vmem>>) attributes {dimension_semantics = [#tpu.dimension_semantics<parallel>, #tpu.dimension_semantics<parallel>], iteration_bounds = array<i64: 2, 1>, scalar_prefetch = 0 : i64, scratch_operands = 0 : i64, tpu.core_type = #tpu.core_type<tc>, window_params = [{transform_indices = @transform_0, window_bounds = array<i64: 8, 32>}, {transform_indices = @transform_1, window_bounds = array<i64: 32, 128>}, {transform_indices = @transform_2, window_bounds = array<i64: 1, 128>}, {transform_indices = @transform_3, window_bounds = array<i64: 8, 128>}]} {
    %c0 = arith.constant 0 : index
    %c0_0 = arith.constant 0 : index
    %0 = vector.load %arg2[%c0, %c0_0] : memref<8x32xf32, #tpu.memory_space<vmem>>, vector<8x32xf32>
    %cst = arith.constant 0.000000e+00 : f32
    %1 = vector.broadcast %cst : f32 to vector<8x32xf32>
    %2 = arith.maximumf %0, %1 : vector<8x32xf32>
    %c0_1 = arith.constant 0 : index
    %c0_2 = arith.constant 0 : index
    %3 = vector.load %arg3[%c0_1, %c0_2] : memref<32x128xf32, #tpu.memory_space<vmem>>, vector<32x128xf32>
    %cst_3 = arith.constant dense<0.000000e+00> : vector<8x128xf32>
    %4 = tpu.matmul %2, %3, %cst_3 {dimension_numbers = #tpu.dot_dimension_numbers<[1], [0], [0], [1], [0, 0, 1, 1], [], []>} : vector<8x32xf32>, vector<32x128xf32>, vector<8x128xf32> -> vector<8x128xf32>
    %c0_4 = arith.constant 0 : index
    %c0_5 = arith.constant 0 : index
    %5 = vector.load %arg4[%c0_4, %c0_5] : memref<1x128xf32, #tpu.memory_space<vmem>>, vector<1x128xf32>
    %6 = vector.broadcast %5 : vector<1x128xf32> to vector<8x128xf32>
    %7 = arith.addf %4, %6 : vector<8x128xf32>
    %c0_6 = arith.constant 0 : index
    %c0_7 = arith.constant 0 : index
    %8 = vector.load %arg5[%c0_6, %c0_7] : memref<8x128xf32, #tpu.memory_space<vmem>>, vector<8x128xf32>
    tpu.vector_store %arg5[%c0_6, %c0_7], %7 {strides = array<i32>} : memref<8x128xf32, #tpu.memory_space<vmem>>, vector<8x128xf32>,
    return
  }
  func.func @transform_0(%arg0: i32, %arg1: i32) -> (i32, i32) {
    %c0_i32 = arith.constant 0 : i32
    %c0_i32_0 = arith.constant 0 : i32
    return %arg0, %c0_i32 : i32, i32
  }
  func.func @transform_1(%arg0: i32, %arg1: i32) -> (i32, i32) {
    %c0_i32 = arith.constant 0 : i32
    %c0_i32_0 = arith.constant 0 : i32
    return %c0_i32, %arg1 : i32, i32
  }
  func.func @transform_2(%arg0: i32, %arg1: i32) -> (i32, i32) {
    %c0_i32 = arith.constant 0 : i32
    %c0_i32_0 = arith.constant 0 : i32
    return %c0_i32, %arg1 : i32, i32
  }
  func.func @transform_3(%arg0: i32, %arg1: i32) -> (i32, i32) {
    %c0_i32 = arith.constant 0 : i32
    return %arg0, %arg1 : i32, i32
  }
}

</mosaic_0001>

<bundles_post_ra>
// kernel: projection_forward.1
= control target key start
LH: loop header
LB: loop body
LE: loop exit
PB: predicated region body
PF: predicated region fallthrough
CT: control target
= control target key end

     0   :  { %8 = vsyncpa [#allocation3], 0  ;;  %s728_s0 = inlined_call_operand.hbm [shape: f32[16,32], index: 0, kind: input, shape index: {}]   ;;  %s729_s1 = inlined_call_operand.hbm [shape: f32[32,128], index: 1, kind: input, shape index: {}]   ;;  %s730_s2 = inlined_call_operand.vmem [shape: f32[1,128], index: 2, kind: input, shape index: {}]   ;;  %s731_s3 = inlined_call_operand.vmem [shape: f32[16,128], index: 3, kind: output, shape index: {}]  }
   0x1   :  { %10 = vsyncpa [#allocation3 + $0x1], 0 }
   0x2   :  { %11 = vsyncpa [#allocation5], 0  ;;  %s611_s12 = smov 0   ;;  %s613_s13 = smov 0  }
   0x3   :  { %s615_s14 = smov 0   ;;  %s617_s15 = smov 0  }
   0x4   :  { %s619_s16 = smov 0   ;;  %s621_s17 = smov 0  }
   0x5 LB: > { %s388_s18 = sadd.s32 4294967295, %s586_s17   ;;  %p390_p0 = scmp.ge.s32.totalorder %s586_s17, 1  ;;  %s586_s17 = sphi %s621_s17, %s17_s17   ;;  %s582_s16 = sphi %s619_s16, %s740_s16   ;;  %s578_s15 = sphi %s617_s15, %s739_s15   ;;  %s574_s14 = sphi %s615_s14, %s738_s14   ;;  %s570_s13 = sphi %s613_s13, %s737_s13   ;;  %s566_s12 = sphi %s611_s12, %s736_s12  }
   0x6   : > { %p643_p1 = scmp.eq.s32.totalorder %s388_s18, 0  ;;  %p140_p2 = scmp.lt.s32.totalorder %s586_s17, 3 }
   0x7   : > { %s153_s22 = sshll.u32 %s729_s1, 4  ;;  %s588_s24 = smov [#allocation4]   ;;  %s154_s22 = int_to_ptr.hbm [resolvable:$true] %s153_s22 }
   0x8   : > { %p651_p3 = pnand %p390_p0, %p140_p2  ;;  %s155_s25 = sshll.u32 %s588_s24, 4  ;;  %s156_s25 = int_to_ptr.vmem [resolvable:$true] %s155_s25 }
   0x9   : > { %s589_s26 = smov 128   ;;  %s590_s27 = smov 8  }
   0xa   : > { %p409_p4 = pneg %p651_p3  ;;  %s29_s28 = sadd.s32 1, %s582_s16 }
   0xb   : > { %p31_p6 = scmp.ge.s32.totalorder %s29_s28, 2  ;;  %p43_p7 = scmp.ne.s32.totalorder %s574_s14, %s570_s13 }
   0xc   : > { %p410_p5 = pnand %p409_p4, %p643_p1  ;;  %p44_p8 = scmp.eq.s32.totalorder %s586_s17, 0 }
   0xd   : > { %s742_s28 = smov (%p31_p6, %s29_s28), 0  ;;  %s36_s29 = sadd.s32 1, %s574_s14 }
   0xe   : > { %412 = dma.hbm_to_vmem [thread:$0]  (!%p410_p5), %s154_s22, 512, %s156_s25, [#allocation5], %s589_s26, %s589_s26, %s590_s27  }
   0xf   : > { %p49_p9 = scmp.ne.s32.totalorder %s570_s13, %s566_s12  ;;  %s33_s30 = ssub.s32 %s582_s16, %s742_s28 }
  0x10   : > { %p670_p10 = por %p44_p8, %p43_p7  ;;  %p34_p11 = scmp.eq.s32.totalorder %s33_s30, 0 }
  0x11   : > { %p676_p12 = por %p643_p1, %p49_p9  ;;  %s175_s6 = sand.u32 1, %s574_s14  }
  0x12   : > { %s395_s7 = sshll.u32 %s582_s16, 3  ;;  %p418_p13 = scmp.lt.s32.totalorder %s586_s17, 2 }
  0x13   : > { %s683_s8 = scalar_select %p34_p11, %s574_s14, %s36_s29  }
  0x14   : > { %s394_s9 = sshll.u32 %s175_s6, 3  ;;  %s183_s12 = scalar_lea.hbm %s728_s0, %s395_s7 }
  0x15   : > { %s185_s18 = sshll.u32 %s183_s12, 4  ;;  %s179_s20 = scalar_lea.vmem [#allocation2], %s394_s9  ;;  %s186_s18 = int_to_ptr.hbm [resolvable:$true] %s185_s18 }
  0x16   : > { %s187_s21 = sshll.u32 %s179_s20, 4  ;;  %p414_p0 = pnand %p418_p13, %p670_p10  ;;  %s188_s21 = int_to_ptr.vmem [resolvable:$true] %s187_s21 }
  0x17   : > { %s176_s22 = scalar_lea.sflag [#allocation3], %s175_s6  ;;  %196 = sbr.rel (%p651_p3) target bundleno = 168 (0xa8), region = 32 }
  0x18   : > { %416 = dma.hbm_to_vmem [thread:$0]  (!%p414_p0), %s186_s18, 128, %s188_s21, %s176_s22  }
  0x19   : > { %s198_s24 = sand.u32 (!%p651_p3), 1, %s570_s13  }
  0x1a   : > { %s397_s25 = sshll.u32 (!%p651_p3), %s198_s24, 3  ;;  %s199_s26 = scalar_lea.sflag (!%p651_p3), [#allocation3], %s198_s24 }
  0x1b   : > { %s202_s27 = scalar_lea.vmem (!%p651_p3), [#allocation2], %s397_s25 }
  0x1c   : > { %557 = dma.done.wait (%p676_p12), %s199_s26, 128  }
  0x1d   : > { %559 = vsyncadd (%p676_p12), %s199_s26, 4294967168 }
  0x1e   : > { %561 = dma.done.wait (%p643_p1), [#allocation5], 512  }
  0x1f   : > { %563 = vsyncadd (%p643_p1), [#allocation5], 4294966784  ;;  %v251_v0 = vld [vmem:[#allocation4 + $0x18] sm:$0xff]  ;;  %v250_v1 = vld [vmem:[#allocation4 + $0x10] sm:$0xff]  ;;  %vm256_vm0 = vcmask 261120   ;;  %p239_p2 = scmp.lt.s32.totalorder %s578_s15, 1 }
  0x20   : > { %272 = vmatpush.msra.mxu0 %v251_v0  ;;  %v246_v2 = vld [vmem:[%s202_s27] sm:$0xff]  ;;  %v249_v3 = vld [vmem:[#allocation4 + $0x8] sm:$0xff]  ;;  %v248_v4 = vld [vmem:[#allocation4] sm:$0xff] }
  0x21   : > { %v247_v5 = vmax.f32 %v246_v2, 0.0  ;;  %s744_s15 = smov (!%p239_p2, %s578_s15), 1  ;;  %v471_v6 = vld [vmem:[%s730_s2] ss:$0 sm:$0xff] }
  0x22   : > { %273 = vmatpush.msra.mxu0 %v250_v1  ;;  %s399_s23 = sshll.u32 %s744_s15, 3 }
  0x23   : > { %s245_s5 = scalar_lea.vmem %s731_s3, %s399_s23 }
  0x24   : > { %274 = vmatpush.msra.mxu0 %v249_v3 }
  0x26   : > { %275 = vmatpush.msra.mxu0 %v248_v4 }
  0x27   : > { %400 = vmatmul.msk.f32.vlgmr.msra.gmra.mxu0 %vm256_vm0, %v247_v5 }
  0xa4   : > { %v277_v7 = vpop.f32.mrf.mxu0 }
  0xa5   : > { %v278_v8 = vadd.f32 %v471_v6, %v277_v7 }
  0xa7   : > { %280 = vst [vmem:[%s245_s5] sm:$0xff] %v278_v8 }
  0xa8 PF: > { %s17_s17 = sadd.s32 1, %s586_s17   ;;  %s736_s12 = smov %s570_s13 }
  0xa9   : > { %p14_p1 = scmp.ge.s32.totalorder %s17_s17, 4   ;;  %s737_s13 = smov %s574_s14 }
  0xaa   : > { %s738_s14 = smov %s683_s8  ;;  %s739_s15 = smov %s582_s16 }
  0xab   : > { %s740_s16 = smov %s742_s28  ;;  %16 = sbr.rel (!%p14_p1) target bundleno = 5 (0x5), region = 80 }
  0xb0   :  { %306 = vsyncpa [#allocation3], 1 }
  0xb1   :  { %308 = vsyncpa [#allocation3 + $0x1], 1 }
  0xb2   :  { %309 = vsyncpa [#allocation5], 1 }

</bundles_post_ra>
